<compile_context>
chip_gen: v7x
topology: tpu7x:2x2x1
jax: 0.10.0
libtpu: 0.0.40
codegen_flags: <defaults>
</compile_context>

<pallas_src>
import jax
import jax.numpy as jnp
from jax.experimental import pallas as pl
from jax.experimental.pallas import tpu as pltpu


def _round_up(x, m):
    return ((x + m - 1) // m) * m


def _diag_gaussian_kernel(x_ref, w_ref, b_ref, logstd_ref, mean_ref, std_ref):
    # In-kernel cast of the x tile to the weight dtype (bf16 by default):
    # free VPU work, and it keeps the HBM read of x to a single f32 pass with
    # no separate wrapper cast kernel.
    x = x_ref[...].astype(w_ref.dtype)
    acc = jnp.dot(x, w_ref[...], preferred_element_type=jnp.float32)
    mean_ref[...] = (acc + b_ref[...]).astype(mean_ref.dtype)
    # std = exp(logstd) broadcast over the batch tile; exp uses the EUP slot
    # (idle in this kernel) and the broadcast is a cheap sublane fill.
    std_ref[...] = jnp.broadcast_to(
        jnp.exp(logstd_ref[...].astype(jnp.float32)), std_ref.shape
    ).astype(std_ref.dtype)


def _choose_batch_tile(batch, block_b):
    if batch <= 8:
        # Block second-to-last dim equal to the full array dim is always legal.
        return batch
    tb = min(block_b, (batch // 8) * 8)          # multiple of 8 sublanes
    # v7x has two TensorCores: give the "parallel" grid axis >= 2 steps for
    # mid/large batches so both cores get work.  (On single-TC v5e/v6e this
    # only adds one ~0.35 us grid step.)
    if pl.cdiv(batch, tb) < 2 and batch >= 128:
        tb = _round_up(pl.cdiv(batch, 2), 8)
    return tb


def diag_gaussian_forward(x, w_t, b, logstd, *, block_b=1024):
    """DiagGaussian forward.

    x:      [B, num_inputs]             activations (f32 typically)
    w_t:    [num_inputs, num_outputs]   pre-transposed Linear weight, already
                                        in the MXU input dtype (bf16 default)
    b:      [1, num_outputs]            Linear bias (f32)
    logstd: [1, num_outputs]            AddBias parameter (f32)

    Returns (mean, std), each [B, num_outputs] in x.dtype — the parameters of
    the Normal(mean, std) distribution the PyTorch module returns.
    """
    B, K = x.shape
    K_w, N = w_t.shape
    assert K_w == K
    out_dtype = x.dtype

    TB = _choose_batch_tile(B, block_b)
    grid = (pl.cdiv(B, TB),)

    # Advisory cost so XLA schedules around the call sensibly.
    cost = pl.CostEstimate(
        flops=2 * B * K * N,
        transcendentals=grid[0] * N,
        bytes_accessed=(B * K * jnp.dtype(x.dtype).itemsize
                        + K * N * jnp.dtype(w_t.dtype).itemsize
                        + 2 * N * 4
                        + 2 * B * N * jnp.dtype(out_dtype).itemsize),
    )

    # W ([K, N]) and the two parameter rows are resident (constant index_map).
    # NOTE: for very large K*N on v7x (32 MiB scoped / 64 MiB physical VMEM),
    # raise vmem_limit_bytes via CompilerParams or shrink block_b.
    mean, std = pl.pallas_call(
        _diag_gaussian_kernel,
        out_shape=(
            jax.ShapeDtypeStruct((B, N), out_dtype),
            jax.ShapeDtypeStruct((B, N), out_dtype),
        ),
        grid_spec=pltpu.PrefetchScalarGridSpec(
            num_scalar_prefetch=0,
            grid=grid,
            in_specs=[
                pl.BlockSpec((TB, K), lambda i: (i, 0)),   # x tile, pipelined
                pl.BlockSpec((K, N), lambda i: (0, 0)),    # W resident
                pl.BlockSpec((1, N), lambda i: (0, 0)),    # bias resident
                pl.BlockSpec((1, N), lambda i: (0, 0)),    # logstd resident
            ],
            out_specs=[
                pl.BlockSpec((TB, N), lambda i: (i, 0)),   # mean
                pl.BlockSpec((TB, N), lambda i: (i, 0)),   # std
            ],
        ),
        compiler_params=pltpu.CompilerParams(
            dimension_semantics=("parallel",),
        ),
        cost_estimate=cost,
    )(x, w_t, b, logstd)

    return mean, std


def init_params(key, num_inputs, num_outputs, *, mxu_dtype=jnp.bfloat16):
    """Deterministic re-implementation of the module's init, with all
    per-forward weight prep hoisted here (done once, not per step):
      - fc_mean weight: init_normc_ (N(0,1) rows, each normalized to unit L2
        over the input dim); stored transposed as [num_inputs, num_outputs]
        and already cast to the MXU input dtype (bf16 by default; pass
        mxu_dtype=jnp.float32 to keep the full-precision matmul).
      - fc_mean bias: zeros ([1, num_outputs], f32)
      - logstd AddBias parameter: zeros ([1, num_outputs], f32)
    """
    w = jax.random.normal(key, (num_outputs, num_inputs), dtype=jnp.float32)
    w = w / jnp.sqrt(jnp.sum(w * w, axis=1, keepdims=True))
    w_t = jnp.asarray(w.T, dtype=mxu_dtype)            # [num_inputs, num_outputs]
    b = jnp.zeros((1, num_outputs), dtype=jnp.float32)
    logstd = jnp.zeros((1, num_outputs), dtype=jnp.float32)
    return w_t, b, logstd


if __name__ == "__main__":
    key = jax.random.PRNGKey(0)
    k_x, k_w = jax.random.split(key)

    batch, num_inputs, num_outputs = 8, 32, 16
    x = jax.random.normal(k_x, (batch, num_inputs), dtype=jnp.float32)
    w_t, b, logstd = init_params(k_w, num_inputs, num_outputs)

    mean, std = diag_gaussian_forward(x, w_t, b, logstd)
    jax.block_until_ready((mean, std))

    assert mean.shape == (batch, num_outputs) and std.shape == (batch, num_outputs)
    assert mean.dtype == x.dtype and std.dtype == x.dtype

    # Reference mirroring the kernel's bf16-input / f32-accumulate MXU path.
    mean_ref_bf16 = (
        jnp.dot(x.astype(jnp.bfloat16), w_t, preferred_element_type=jnp.float32)
        + b
    ).astype(x.dtype)
    assert jnp.allclose(mean, mean_ref_bf16, atol=1e-5, rtol=1e-5)

    # Full-precision reference (looser tolerance for the bf16 MXU inputs).
    mean_ref_f32 = x @ w_t.astype(jnp.float32) + b
    assert jnp.allclose(mean, mean_ref_f32, atol=3e-2, rtol=3e-2)

    std_ref = jnp.exp(jnp.broadcast_to(logstd, (batch, num_outputs)))
    assert jnp.allclose(std, std_ref, atol=1e-6, rtol=1e-6)

    # TODO(synk): torch.distributions.Normal object itself has no Pallas
    # equivalent; we return its (mean, std) parameters.
    print("KERNEL_OK")
</pallas_src>

<mosaic_0001>
module attributes {stable_mosaic.version = 11 : i64} {
  func.func @_diag_gaussian_kernel(%arg0: i32, %arg1: memref<8x32xf32, #tpu.memory_space<vmem>>, %arg2: memref<32x16xbf16, #tpu.memory_space<vmem>>, %arg3: memref<1x16xf32, #tpu.memory_space<vmem>>, %arg4: memref<1x16xf32, #tpu.memory_space<vmem>>, %arg5: memref<8x16xf32, #tpu.memory_space<vmem>>, %arg6: memref<8x16xf32, #tpu.memory_space<vmem>>) attributes {dimension_semantics = [#tpu.dimension_semantics<parallel>], iteration_bounds = array<i64: 1>, scalar_prefetch = 0 : i64, scratch_operands = 0 : i64, tpu.core_type = #tpu.core_type<tc>, window_params = [{transform_indices = @transform_0, window_bounds = array<i64: 8, 32>}, {pipeline_mode = #tpu.pipeline_mode<synchronous>, transform_indices = @transform_1, window_bounds = array<i64: 32, 16>}, {pipeline_mode = #tpu.pipeline_mode<synchronous>, transform_indices = @transform_2, window_bounds = array<i64: 1, 16>}, {pipeline_mode = #tpu.pipeline_mode<synchronous>, transform_indices = @transform_3, window_bounds = array<i64: 1, 16>}, {transform_indices = @transform_4, window_bounds = array<i64: 8, 16>}, {transform_indices = @transform_5, window_bounds = array<i64: 8, 16>}]} {
    %c0 = arith.constant 0 : index
    %c0_0 = arith.constant 0 : index
    %0 = vector.load %arg1[%c0, %c0_0] : memref<8x32xf32, #tpu.memory_space<vmem>>, vector<8x32xf32>
    %1 = arith.truncf %0 : vector<8x32xf32> to vector<8x32xbf16>
    %c0_1 = arith.constant 0 : index
    %c0_2 = arith.constant 0 : index
    %2 = vector.load %arg2[%c0_1, %c0_2] : memref<32x16xbf16, #tpu.memory_space<vmem>>, vector<32x16xbf16>
    %cst = arith.constant dense<0.000000e+00> : vector<8x16xf32>
    %3 = tpu.matmul %1, %2, %cst {dimension_numbers = #tpu.dot_dimension_numbers<[1], [0], [0], [1], [0, 0, 1, 1], [], []>} : vector<8x32xbf16>, vector<32x16xbf16>, vector<8x16xf32> -> vector<8x16xf32>
    %c0_3 = arith.constant 0 : index
    %c0_4 = arith.constant 0 : index
    %4 = vector.load %arg3[%c0_3, %c0_4] : memref<1x16xf32, #tpu.memory_space<vmem>>, vector<1x16xf32>
    %5 = vector.broadcast %4 : vector<1x16xf32> to vector<8x16xf32>
    %6 = arith.addf %3, %5 : vector<8x16xf32>
    %c0_5 = arith.constant 0 : index
    %c0_6 = arith.constant 0 : index
    %7 = vector.load %arg5[%c0_5, %c0_6] : memref<8x16xf32, #tpu.memory_space<vmem>>, vector<8x16xf32>
    tpu.vector_store %arg5[%c0_5, %c0_6], %6 {strides = array<i32>} : memref<8x16xf32, #tpu.memory_space<vmem>>, vector<8x16xf32>,
    %c0_7 = arith.constant 0 : index
    %c0_8 = arith.constant 0 : index
    %8 = vector.load %arg4[%c0_7, %c0_8] : memref<1x16xf32, #tpu.memory_space<vmem>>, vector<1x16xf32>
    %9 = math.exp %8 : vector<1x16xf32>
    %10 = vector.shape_cast %9 : vector<1x16xf32> to vector<1x16xf32>
    %11 = vector.broadcast %10 : vector<1x16xf32> to vector<8x16xf32>
    %c0_9 = arith.constant 0 : index
    %c0_10 = arith.constant 0 : index
    %12 = vector.load %arg6[%c0_9, %c0_10] : memref<8x16xf32, #tpu.memory_space<vmem>>, vector<8x16xf32>
    tpu.vector_store %arg6[%c0_9, %c0_10], %11 {strides = array<i32>} : memref<8x16xf32, #tpu.memory_space<vmem>>, vector<8x16xf32>,
    return
  }
  func.func @transform_0(%arg0: i32) -> (i32, i32) {
    %c0_i32 = arith.constant 0 : i32
    %c0_i32_0 = arith.constant 0 : i32
    return %arg0, %c0_i32 : i32, i32
  }
  func.func @transform_1(%arg0: i32) -> (i32, i32) {
    %c0_i32 = arith.constant 0 : i32
    %c0_i32_0 = arith.constant 0 : i32
    %c0_i32_1 = arith.constant 0 : i32
    return %c0_i32, %c0_i32_0 : i32, i32
  }
  func.func @transform_2(%arg0: i32) -> (i32, i32) {
    %c0_i32 = arith.constant 0 : i32
    %c0_i32_0 = arith.constant 0 : i32
    %c0_i32_1 = arith.constant 0 : i32
    return %c0_i32, %c0_i32_0 : i32, i32
  }
  func.func @transform_3(%arg0: i32) -> (i32, i32) {
    %c0_i32 = arith.constant 0 : i32
    %c0_i32_0 = arith.constant 0 : i32
    %c0_i32_1 = arith.constant 0 : i32
    return %c0_i32, %c0_i32_0 : i32, i32
  }
  func.func @transform_4(%arg0: i32) -> (i32, i32) {
    %c0_i32 = arith.constant 0 : i32
    %c0_i32_0 = arith.constant 0 : i32
    return %arg0, %c0_i32 : i32, i32
  }
  func.func @transform_5(%arg0: i32) -> (i32, i32) {
    %c0_i32 = arith.constant 0 : i32
    %c0_i32_0 = arith.constant 0 : i32
    return %arg0, %c0_i32 : i32, i32
  }
}

</mosaic_0001>

<bundles_post_ra>
// kernel: tpu_custom_call.1
= control target key start
LH: loop header
LB: loop body
LE: loop exit
PB: predicated region body
PF: predicated region fallthrough
CT: control target
= control target key end

     0   :  { %11 = vsyncpa [#allocation3], 0  ;;  %v202_v1 = vmov 0.0   ;;  %vm203_vm0 = vmmov 0   ;;  %s277_s0 = inlined_call_operand.vmem [shape: f32[8,32], index: 0, kind: input, shape index: {}]   ;;  %s278_s1 = inlined_call_operand.vmem [shape: bf16[32,16], index: 1, kind: input, shape index: {}]   ;;  %s279_s2 = inlined_call_operand.vmem [shape: f32[1,16], index: 2, kind: input, shape index: {}]   ;;  %s280_s3 = inlined_call_operand.vmem [shape: f32[1,16], index: 3, kind: input, shape index: {}]   ;;  %s281_s4 = inlined_call_operand.hbm [shape: f32[8,16], index: 4, kind: output, shape index: {0}]   ;;  %s282_s5 = inlined_call_operand.hbm [shape: f32[8,16], index: 5, kind: output, shape index: {1}]  }
   0x1   :  { %v150_v0 = vld [vmem:[%s278_s1] sm:$0xff]   ;;  %138 = vmatprep.subr.bf16.mxu0 %v202_v1  ;;  %v151_v2 = vld [vmem:[%s278_s1 + $0x8] sm:$0xff]   ;;  %142 = vmatprep.mubr.msk.bf16.mxu0 %vm203_vm0, %v202_v1 }
   0x2   :  { %139 = vmatpush3.bf16.msra.mxu0 %v150_v0  ;;  %v22_v3 = vld [vmem:[%s277_s0] sm:$0xff] }
   0x3   :  { %12 = vsyncpa [#allocation5], 0  ;;  %140 = vmatprep.subr.bf16.mxu0 %v202_v1  ;;  %v23_v4 = vpack.c.bf16 %v22_v3, %v22_v3  ;;  %vm47_vm1 = vcmask 261120   ;;  %v93_v5 = vld [vmem:[%s280_s3] sm:$0x1]  ;;  %v97_v7 = vlaneseq  ;;  %vm91_vm2 = vcmask 130048  }
   0x4   :  { %v94_v6 = vmul.f32 1.442695, %v93_v5  ;;  %s204_s1 = smov [#allocation4]  }
   0x5   :  { %v98_v8 = vshrl.u32 %v97_v7, 7  ;;  %s119_s0 = sshll.u32 %s204_s1, 4  ;;  %s120_s0 = int_to_ptr.vmem [resolvable:$true] %s119_s0 }
   0x6   :  { %141 = vmatpush3.bf16.msra.mxu0 %v151_v2  ;;  %152 = vpow2.f32 %v94_v6  ;;  %s154_s26 = scalar_lea.vmem %s120_s0, 128  ;;  %p159_p1 = scmp.lt.s32.totalorder %s120_s0, %s120_s0 }
   0x7   :  { %v99_v9 = vsub.s32 0, %v98_v8  ;;  %p155_p0 = scmp.ne.s32.totalorder %s120_s0, %s154_s26  ;;  %p160_p2 = scmp.lt.s32.totalorder %s154_s26, %s154_s26 }
   0x9   :  { %143 = vmatmul.mubr.msk.bf16.vlgmr.msra.gmra.mrb[0].mxu0 %vm47_vm1, %v23_v4  ;;  %p161_p3 = por %p160_p2, %p159_p1 }
   0xb   :  { %p162_p4 = pnand %p161_p3, %p155_p0 }
  0x10   :  { %v153_v10 = vpop.eup %152 }
  0x11   :  { %v100_v11 = vrot.slane %v153_v10, %v99_v9 }
  0x13   :  { %102 = vst.msk [vmem:[#allocation4] sm:$0xff] %vm91_vm2, %v100_v11 }
  0x14   :  { %165 = shalt.err (!%p162_p4)
}
  0x15   :  { %s166_s28 = scalar_lea.hbm %s282_s5, 128 }
  0x16   :  { %p167_p5 = scmp.ne.s32.totalorder %s282_s5, %s166_s28  ;;  %p170_p6 = scmp.lt.u32.totalorder %s166_s28, %s282_s5 }
  0x18   :  { %p172_p7 = pnand %p170_p6, %p167_p5 }
  0x1a   :  { %175 = shalt.err (!%p172_p7)
}
  0x1b   :  { %122 = dma.vmem_to_hbm [thread:$0]  %s120_s0, 128, %s282_s5, [#allocation5]   ;;  %v131_v12 = vld [vmem:[%s279_s2] ss:$0 sm:$0xff] }
  0x1c   :  { %s205_s12 = smov [#allocation2]  }
  0x1d   :  { %s109_s13 = sshll.u32 %s205_s12, 4  ;;  %s110_s13 = int_to_ptr.vmem [resolvable:$true] %s109_s13 }
  0x1e   :  { %s176_s14 = scalar_lea.vmem %s110_s13, 128  ;;  %p181_p9 = scmp.lt.s32.totalorder %s110_s13, %s110_s13 }
  0x1f   :  { %p177_p8 = scmp.ne.s32.totalorder %s110_s13, %s176_s14  ;;  %p182_p10 = scmp.lt.s32.totalorder %s176_s14, %s176_s14 }
  0x21   :  { %p183_p11 = por %p182_p10, %p181_p9 }
  0x23   :  { %p184_p12 = pnand %p183_p11, %p177_p8 }
  0xdc   :  { %v85_v13 = vpop.f32.mrb[0].mxu0 }
  0xdd   :  { %v86_v14 = vadd.f32 %v131_v12, %v85_v13  ;;  %v144_v15 = vpop.f32.mrb[1].mxu0 }
  0xde   :  { %v88_v16 = vpop.f32.mrb[2].mxu0 }
  0xdf   :  { %v145_v17 = vpop.f32.mrb[3].mxu0  ;;  %92 = vst.msk [vmem:[#allocation2] sm:$0xff] %vm91_vm2, %v86_v14 }
  0xe0   :  { %187 = shalt.err (!%p184_p12)
}
  0xe1   :  { %s188_s2 = scalar_lea.hbm %s281_s4, 128 }
  0xe2   :  { %p189_p13 = scmp.ne.s32.totalorder %s281_s4, %s188_s2  ;;  %p192_p0 = scmp.lt.u32.totalorder %s188_s2, %s281_s4 }
  0xe4   :  { %p194_p1 = pnand %p192_p0, %p189_p13 }
  0xe6   :  { %197 = shalt.err (!%p194_p1)
}
  0xe7   :  { %112 = dma.vmem_to_hbm [thread:$0]  %s110_s13, 128, %s281_s4, [#allocation3]  }
  0xe8   :  { %198 = dma.done.wait [#allocation3], 128  }
  0xe9   :  { %199 = vsyncadd [#allocation3], 4294967168 }
  0xea   :  { %200 = dma.done.wait [#allocation5], 128  }
  0xeb   :  { %201 = vsyncadd [#allocation5], 4294967168 }
  0xec   :  { %129 = vsyncpa [#allocation3], 1 }
  0xed   :  { %130 = vsyncpa [#allocation5], 1 }

</bundles_post_ra>
